<compile_context>
chip_gen: v6e
topology: v6e:2x2x1
jax: 0.10.0
libtpu: 0.0.40
codegen_flags: <defaults>
</compile_context>

<pallas_src>
import jax
import jax.numpy as jnp
from jax.experimental import pallas as pl
from jax.experimental.pallas import tpu as pltpu


def _round_up(x, m):
    return ((x + m - 1) // m) * m


def mlp_classifier_kernel(ids_ref, mask_ref, m_ref, b1_ref, w2_ref, b2_ref,
                          out_ref):
    ids = ids_ref[...]                      # (TB, S) int32
    mask = mask_ref[...]                    # (TB, S) f32
    tb, s = ids.shape
    v_pad = m_ref.shape[0]

    # Masked token counts accumulated into a single 2-D (TB, V_pad) buffer:
    #   counts[b, v] = sum_s mask[b, s] * (ids[b, s] == v)
    # Unrolled over S with static slices (S is a trace-time constant), so no
    # (TB, S, V_pad) intermediate is ever materialized.
    # TODO(synk): for very long sequences (S in the hundreds) move S onto a
    # grid axis / lax.fori_loop instead of fully unrolling.
    vocab_iota = jax.lax.broadcasted_iota(jnp.int32, (tb, v_pad), 1)
    counts = jnp.zeros((tb, v_pad), jnp.float32)
    for t in range(s):
        counts = counts + jnp.where(ids[:, t, None] == vocab_iota,
                                    mask[:, t, None], 0.0)

    denom = jnp.sum(mask, axis=1, keepdims=True)             # (TB, 1)
    # NOTE: all-zero mask rows give inf/NaN (0/0), matching PyTorch semantics.
    recip = pl.reciprocal(denom, approx=True)                # (TB, 1), EUP slot

    # Fused gather-matmul + fc1:  (sum_s mask*emb[id]) @ W1^T == counts @ M,
    # and the per-row 1/denom commutes through the matmul.
    # counts are small exact integers -> bf16 cast is lossless for S <= 256.
    pre1 = jnp.dot(counts.astype(jnp.bfloat16), m_ref[...],
                   preferred_element_type=jnp.float32)       # (TB, H) f32
    h = jnp.maximum(recip * pre1 + b1_ref[...], 0.0)         # fc1 + ReLU, f32

    # fc2 -> lane-dense padded logits
    out_ref[...] = jnp.dot(h.astype(jnp.bfloat16), w2_ref[...],
                           preferred_element_type=jnp.float32) + b2_ref[...]


def prepare_kernel_params(params):
    """One-time layout prep: pad / fuse / transpose / cast weights."""
    emb = params["embedding"].astype(jnp.float32)            # (V, E)
    v, e = emb.shape
    v_pad = _round_up(max(v, 128), 128)
    emb_p = jnp.zeros((v_pad, e), jnp.float32).at[:v].set(emb)

    w1 = params["w1"].astype(jnp.float32)                    # (H, E) torch layout
    hdim = w1.shape[0]
    # Algebraic fusion of the embedding matmul with fc1: M = emb @ W1^T.
    m = jnp.dot(emb_p, jnp.transpose(w1)).astype(jnp.bfloat16)   # (V_pad, H)
    b1 = params["b1"].reshape(1, hdim).astype(jnp.float32)

    w2 = params["w2"].astype(jnp.float32)                    # (C, H)
    c = w2.shape[0]
    c_pad = _round_up(max(c, 128), 128)                      # lane-dense logits
    w2t = jnp.zeros((hdim, c_pad), jnp.float32).at[:, :c].set(jnp.transpose(w2))
    w2t = w2t.astype(jnp.bfloat16)                           # (H, C_pad)
    b2 = jnp.zeros((1, c_pad), jnp.float32).at[0, :c].set(
        params["b2"].astype(jnp.float32))

    return {"m": m, "b1": b1, "w2t": w2t, "b2": b2,
            "num_classes": c, "vocab_size": v}


def mlp_classifier_forward(input_ids, attention_mask, kparams, *, block_b=None):
    """Fused gather + masked mean-pool + MLP forward in one pallas_call."""
    # TODO(synk): for vocabularies too large to keep M = emb @ W1^T
    # VMEM-resident, fall back to an XLA / manual-DMA gather outside the kernel.
    m = kparams["m"]                    # (V_pad, H)  bf16
    b1 = kparams["b1"]                  # (1, H)      f32
    w2t = kparams["w2t"]                # (H, C_pad)  bf16
    b2 = kparams["b2"]                  # (1, C_pad)  f32
    c = kparams["num_classes"]

    b, s = input_ids.shape
    v_pad, hdim = m.shape
    c_pad = w2t.shape[1]

    if block_b is None:
        # Bigger row tiles amortize per-grid-step overhead (plenty of VMEM
        # headroom on v5e/v6e, and the per-block working set is small).
        block_b = min(256, _round_up(b, 8))
        # v7x: make sure the "parallel" batch axis has >= 2 grid steps so it
        # shards across both TensorCores (tile stays a multiple of 8 rows).
        while block_b > 8 and pl.cdiv(b, block_b) < 2:
            block_b = _round_up(block_b // 2, 8)
    b_pad = _round_up(b, block_b)
    grid_b = b_pad // block_b

    # Token ids >= vocab_size are silently dropped from counts (standard
    # embedding-lookup precondition: ids must be < vocab_size).
    ids = input_ids.astype(jnp.int32)
    msk = attention_mask.astype(jnp.float32)
    if b_pad != b:  # pad only when the batch doesn't already tile evenly
        ids = jnp.zeros((b_pad, s), jnp.int32).at[:b].set(ids)
        msk = jnp.zeros((b_pad, s), jnp.float32).at[:b].set(msk)

    # Explicit VMEM budget: single-buffered weights + double-buffered
    # activation blocks + compiler scratch headroom.
    weight_bytes = m.size * 2 + b1.size * 4 + w2t.size * 2 + b2.size * 4
    block_bytes = block_b * (2 * s * 4 + c_pad * 4)
    vmem_limit = int(min(64 * 1024 * 1024,
                         max(32 * 1024 * 1024,
                             2 * weight_bytes + 4 * block_bytes
                             + 8 * 1024 * 1024)))

    def _const_spec(shape):
        # Grid-invariant weights: constant index_map, single-buffered.
        return pl.BlockSpec(shape, lambda i: (0, 0),
                            pipeline_mode=pl.Buffered(1))

    logits_padded = pl.pallas_call(
        mlp_classifier_kernel,
        out_shape=jax.ShapeDtypeStruct((b_pad, c_pad), jnp.float32),
        grid=(grid_b,),
        in_specs=[
            pl.BlockSpec((block_b, s), lambda i: (i, 0)),     # input_ids
            pl.BlockSpec((block_b, s), lambda i: (i, 0)),     # attention_mask
            _const_spec((v_pad, hdim)),                       # M = emb @ W1^T
            _const_spec((1, hdim)),                           # b1
            _const_spec((hdim, c_pad)),                       # W2^T (padded)
            _const_spec((1, c_pad)),                          # b2 (padded)
        ],
        out_specs=pl.BlockSpec((block_b, c_pad), lambda i: (i, 0)),
        compiler_params=pltpu.CompilerParams(
            dimension_semantics=("parallel",),
            vmem_limit_bytes=vmem_limit),
    )(ids, msk, m, b1, w2t, b2)

    return logits_padded[:b, :c]


def init_params(key, vocab_size, embed_dim=128, hidden_dim=256, num_classes=4):
    k_emb, k_w1, k_b1, k_w2, k_b2 = jax.random.split(key, 5)
    embedding = jax.random.normal(k_emb, (vocab_size, embed_dim),
                                  dtype=jnp.float32) * 0.02
    embedding = embedding.at[0].set(0.0)          # padding_idx=0 -> zero row
    w1 = jax.random.normal(k_w1, (hidden_dim, embed_dim),
                           dtype=jnp.float32) * (1.0 / jnp.sqrt(embed_dim))
    b1 = jax.random.normal(k_b1, (hidden_dim,), dtype=jnp.float32) * 0.01
    w2 = jax.random.normal(k_w2, (num_classes, hidden_dim),
                           dtype=jnp.float32) * (1.0 / jnp.sqrt(hidden_dim))
    b2 = jax.random.normal(k_b2, (num_classes,), dtype=jnp.float32) * 0.01
    return {"embedding": embedding, "w1": w1, "b1": b1, "w2": w2, "b2": b2}


def mlp_classifier_reference(input_ids, attention_mask, params):
    """Pure-JAX reference matching the PyTorch module exactly (f32)."""
    embeds = params["embedding"][input_ids]                  # (B, S, E)
    mask = attention_mask.astype(jnp.float32)[:, :, None]    # (B, S, 1)
    pooled = (embeds * mask).sum(1) / mask.sum(1)
    h = jax.nn.relu(pooled @ params["w1"].T + params["b1"])
    return h @ params["w2"].T + params["b2"]


if __name__ == "__main__":
    key = jax.random.PRNGKey(0)
    k_params, k_ids, _ = jax.random.split(key, 3)

    vocab_size = 50
    embed_dim = 128
    hidden_dim = 256
    num_classes = 4
    B, S = 2, 8

    params = init_params(k_params, vocab_size, embed_dim, hidden_dim,
                         num_classes)
    kparams = prepare_kernel_params(params)   # one-time layout prep

    input_ids = jax.random.randint(k_ids, (B, S), 0, vocab_size,
                                   dtype=jnp.int32)
    lengths = jnp.array([5, 8], dtype=jnp.int32)
    attention_mask = (jnp.arange(S)[None, :] < lengths[:, None]).astype(
        jnp.float32)

    logits = mlp_classifier_forward(input_ids, attention_mask, kparams)
    jax.block_until_ready(logits)

    ref = mlp_classifier_reference(input_ids, attention_mask, params)

    assert logits.shape == (B, num_classes)
    assert logits.dtype == jnp.float32
    assert bool(jnp.all(jnp.isfinite(logits)))
    assert bool(jnp.allclose(logits, ref, atol=5e-2, rtol=5e-2))

    print("KERNEL_OK")
</pallas_src>

<mosaic_0001>
module attributes {stable_mosaic.version = 11 : i64} {
  func.func @mlp_classifier_kernel(%arg0: i32, %arg1: memref<8x8xi32, #tpu.memory_space<vmem>>, %arg2: memref<8x8xf32, #tpu.memory_space<vmem>>, %arg3: memref<128x256xbf16, #tpu.memory_space<vmem>>, %arg4: memref<1x256xf32, #tpu.memory_space<vmem>>, %arg5: memref<256x128xbf16, #tpu.memory_space<vmem>>, %arg6: memref<1x128xf32, #tpu.memory_space<vmem>>, %arg7: memref<8x128xf32, #tpu.memory_space<vmem>>) attributes {dimension_semantics = [#tpu.dimension_semantics<parallel>], iteration_bounds = array<i64: 1>, scalar_prefetch = 0 : i64, scratch_operands = 0 : i64, tpu.core_type = #tpu.core_type<tc>, window_params = [{transform_indices = @transform_0, window_bounds = array<i64: 8, 8>}, {transform_indices = @transform_1, window_bounds = array<i64: 8, 8>}, {pipeline_mode = #tpu.pipeline_mode<synchronous>, transform_indices = @transform_2, window_bounds = array<i64: 128, 256>}, {pipeline_mode = #tpu.pipeline_mode<synchronous>, transform_indices = @transform_3, window_bounds = array<i64: 1, 256>}, {pipeline_mode = #tpu.pipeline_mode<synchronous>, transform_indices = @transform_4, window_bounds = array<i64: 256, 128>}, {pipeline_mode = #tpu.pipeline_mode<synchronous>, transform_indices = @transform_5, window_bounds = array<i64: 1, 128>}, {transform_indices = @transform_6, window_bounds = array<i64: 8, 128>}]} {
    %c0 = arith.constant 0 : index
    %c0_0 = arith.constant 0 : index
    %0 = vector.load %arg1[%c0, %c0_0] : memref<8x8xi32, #tpu.memory_space<vmem>>, vector<8x8xi32>
    %c0_1 = arith.constant 0 : index
    %c0_2 = arith.constant 0 : index
    %1 = vector.load %arg2[%c0_1, %c0_2] : memref<8x8xf32, #tpu.memory_space<vmem>>, vector<8x8xf32>
    %2 = tpu.iota {dimensions = array<i32: 1>} : vector<8x128xi32>
    %cst = arith.constant 0.000000e+00 : f32
    %3 = vector.broadcast %cst : f32 to vector<8x128xf32>
    %4 = vector.extract_strided_slice %0 {offsets = [0, 0], sizes = [8, 1], strides = [1, 1]} : vector<8x8xi32> to vector<8x1xi32>
    %5 = vector.shape_cast %4 : vector<8x1xi32> to vector<8xi32>
    %6 = vector.shape_cast %5 : vector<8xi32> to vector<8x1xi32>
    %7 = vector.broadcast %6 : vector<8x1xi32> to vector<8x128xi32>
    %8 = arith.cmpi eq, %7, %2 : vector<8x128xi32>
    %9 = vector.extract_strided_slice %1 {offsets = [0, 0], sizes = [8, 1], strides = [1, 1]} : vector<8x8xf32> to vector<8x1xf32>
    %10 = vector.shape_cast %9 : vector<8x1xf32> to vector<8xf32>
    %11 = vector.shape_cast %10 : vector<8xf32> to vector<8x1xf32>
    %cst_3 = arith.constant 0.000000e+00 : f32
    %12 = vector.shape_cast %11 : vector<8x1xf32> to vector<8x1xf32>
    %13 = vector.broadcast %12 : vector<8x1xf32> to vector<8x128xf32>
    %14 = vector.broadcast %cst_3 : f32 to vector<8x128xf32>
    %15 = arith.select %8, %13, %14 : vector<8x128xi1>, vector<8x128xf32>
    %16 = arith.addf %3, %15 : vector<8x128xf32>
    %17 = vector.extract_strided_slice %0 {offsets = [0, 1], sizes = [8, 1], strides = [1, 1]} : vector<8x8xi32> to vector<8x1xi32>
    %18 = vector.shape_cast %17 : vector<8x1xi32> to vector<8xi32>
    %19 = vector.shape_cast %18 : vector<8xi32> to vector<8x1xi32>
    %20 = vector.broadcast %19 : vector<8x1xi32> to vector<8x128xi32>
    %21 = arith.cmpi eq, %20, %2 : vector<8x128xi32>
    %22 = vector.extract_strided_slice %1 {offsets = [0, 1], sizes = [8, 1], strides = [1, 1]} : vector<8x8xf32> to vector<8x1xf32>
    %23 = vector.shape_cast %22 : vector<8x1xf32> to vector<8xf32>
    %24 = vector.shape_cast %23 : vector<8xf32> to vector<8x1xf32>
    %cst_4 = arith.constant 0.000000e+00 : f32
    %25 = vector.shape_cast %24 : vector<8x1xf32> to vector<8x1xf32>
    %26 = vector.broadcast %25 : vector<8x1xf32> to vector<8x128xf32>
    %27 = vector.broadcast %cst_4 : f32 to vector<8x128xf32>
    %28 = arith.select %21, %26, %27 : vector<8x128xi1>, vector<8x128xf32>
    %29 = arith.addf %16, %28 : vector<8x128xf32>
    %30 = vector.extract_strided_slice %0 {offsets = [0, 2], sizes = [8, 1], strides = [1, 1]} : vector<8x8xi32> to vector<8x1xi32>
    %31 = vector.shape_cast %30 : vector<8x1xi32> to vector<8xi32>
    %32 = vector.shape_cast %31 : vector<8xi32> to vector<8x1xi32>
    %33 = vector.broadcast %32 : vector<8x1xi32> to vector<8x128xi32>
    %34 = arith.cmpi eq, %33, %2 : vector<8x128xi32>
    %35 = vector.extract_strided_slice %1 {offsets = [0, 2], sizes = [8, 1], strides = [1, 1]} : vector<8x8xf32> to vector<8x1xf32>
    %36 = vector.shape_cast %35 : vector<8x1xf32> to vector<8xf32>
    %37 = vector.shape_cast %36 : vector<8xf32> to vector<8x1xf32>
    %cst_5 = arith.constant 0.000000e+00 : f32
    %38 = vector.shape_cast %37 : vector<8x1xf32> to vector<8x1xf32>
    %39 = vector.broadcast %38 : vector<8x1xf32> to vector<8x128xf32>
    %40 = vector.broadcast %cst_5 : f32 to vector<8x128xf32>
    %41 = arith.select %34, %39, %40 : vector<8x128xi1>, vector<8x128xf32>
    %42 = arith.addf %29, %41 : vector<8x128xf32>
    %43 = vector.extract_strided_slice %0 {offsets = [0, 3], sizes = [8, 1], strides = [1, 1]} : vector<8x8xi32> to vector<8x1xi32>
    %44 = vector.shape_cast %43 : vector<8x1xi32> to vector<8xi32>
    %45 = vector.shape_cast %44 : vector<8xi32> to vector<8x1xi32>
    %46 = vector.broadcast %45 : vector<8x1xi32> to vector<8x128xi32>
    %47 = arith.cmpi eq, %46, %2 : vector<8x128xi32>
    %48 = vector.extract_strided_slice %1 {offsets = [0, 3], sizes = [8, 1], strides = [1, 1]} : vector<8x8xf32> to vector<8x1xf32>
    %49 = vector.shape_cast %48 : vector<8x1xf32> to vector<8xf32>
    %50 = vector.shape_cast %49 : vector<8xf32> to vector<8x1xf32>
    %cst_6 = arith.constant 0.000000e+00 : f32
    %51 = vector.shape_cast %50 : vector<8x1xf32> to vector<8x1xf32>
    %52 = vector.broadcast %51 : vector<8x1xf32> to vector<8x128xf32>
    %53 = vector.broadcast %cst_6 : f32 to vector<8x128xf32>
    %54 = arith.select %47, %52, %53 : vector<8x128xi1>, vector<8x128xf32>
    %55 = arith.addf %42, %54 : vector<8x128xf32>
    %56 = vector.extract_strided_slice %0 {offsets = [0, 4], sizes = [8, 1], strides = [1, 1]} : vector<8x8xi32> to vector<8x1xi32>
    %57 = vector.shape_cast %56 : vector<8x1xi32> to vector<8xi32>
    %58 = vector.shape_cast %57 : vector<8xi32> to vector<8x1xi32>
    %59 = vector.broadcast %58 : vector<8x1xi32> to vector<8x128xi32>
    %60 = arith.cmpi eq, %59, %2 : vector<8x128xi32>
    %61 = vector.extract_strided_slice %1 {offsets = [0, 4], sizes = [8, 1], strides = [1, 1]} : vector<8x8xf32> to vector<8x1xf32>
    %62 = vector.shape_cast %61 : vector<8x1xf32> to vector<8xf32>
    %63 = vector.shape_cast %62 : vector<8xf32> to vector<8x1xf32>
    %cst_7 = arith.constant 0.000000e+00 : f32
    %64 = vector.shape_cast %63 : vector<8x1xf32> to vector<8x1xf32>
    %65 = vector.broadcast %64 : vector<8x1xf32> to vector<8x128xf32>
    %66 = vector.broadcast %cst_7 : f32 to vector<8x128xf32>
    %67 = arith.select %60, %65, %66 : vector<8x128xi1>, vector<8x128xf32>
    %68 = arith.addf %55, %67 : vector<8x128xf32>
    %69 = vector.extract_strided_slice %0 {offsets = [0, 5], sizes = [8, 1], strides = [1, 1]} : vector<8x8xi32> to vector<8x1xi32>
    %70 = vector.shape_cast %69 : vector<8x1xi32> to vector<8xi32>
    %71 = vector.shape_cast %70 : vector<8xi32> to vector<8x1xi32>
    %72 = vector.broadcast %71 : vector<8x1xi32> to vector<8x128xi32>
    %73 = arith.cmpi eq, %72, %2 : vector<8x128xi32>
    %74 = vector.extract_strided_slice %1 {offsets = [0, 5], sizes = [8, 1], strides = [1, 1]} : vector<8x8xf32> to vector<8x1xf32>
    %75 = vector.shape_cast %74 : vector<8x1xf32> to vector<8xf32>
    %76 = vector.shape_cast %75 : vector<8xf32> to vector<8x1xf32>
    %cst_8 = arith.constant 0.000000e+00 : f32
    %77 = vector.shape_cast %76 : vector<8x1xf32> to vector<8x1xf32>
    %78 = vector.broadcast %77 : vector<8x1xf32> to vector<8x128xf32>
    %79 = vector.broadcast %cst_8 : f32 to vector<8x128xf32>
    %80 = arith.select %73, %78, %79 : vector<8x128xi1>, vector<8x128xf32>
    %81 = arith.addf %68, %80 : vector<8x128xf32>
    %82 = vector.extract_strided_slice %0 {offsets = [0, 6], sizes = [8, 1], strides = [1, 1]} : vector<8x8xi32> to vector<8x1xi32>
    %83 = vector.shape_cast %82 : vector<8x1xi32> to vector<8xi32>
    %84 = vector.shape_cast %83 : vector<8xi32> to vector<8x1xi32>
    %85 = vector.broadcast %84 : vector<8x1xi32> to vector<8x128xi32>
    %86 = arith.cmpi eq, %85, %2 : vector<8x128xi32>
    %87 = vector.extract_strided_slice %1 {offsets = [0, 6], sizes = [8, 1], strides = [1, 1]} : vector<8x8xf32> to vector<8x1xf32>
    %88 = vector.shape_cast %87 : vector<8x1xf32> to vector<8xf32>
    %89 = vector.shape_cast %88 : vector<8xf32> to vector<8x1xf32>
    %cst_9 = arith.constant 0.000000e+00 : f32
    %90 = vector.shape_cast %89 : vector<8x1xf32> to vector<8x1xf32>
    %91 = vector.broadcast %90 : vector<8x1xf32> to vector<8x128xf32>
    %92 = vector.broadcast %cst_9 : f32 to vector<8x128xf32>
    %93 = arith.select %86, %91, %92 : vector<8x128xi1>, vector<8x128xf32>
    %94 = arith.addf %81, %93 : vector<8x128xf32>
    %95 = vector.extract_strided_slice %0 {offsets = [0, 7], sizes = [8, 1], strides = [1, 1]} : vector<8x8xi32> to vector<8x1xi32>
    %96 = vector.shape_cast %95 : vector<8x1xi32> to vector<8xi32>
    %97 = vector.shape_cast %96 : vector<8xi32> to vector<8x1xi32>
    %98 = vector.broadcast %97 : vector<8x1xi32> to vector<8x128xi32>
    %99 = arith.cmpi eq, %98, %2 : vector<8x128xi32>
    %100 = vector.extract_strided_slice %1 {offsets = [0, 7], sizes = [8, 1], strides = [1, 1]} : vector<8x8xf32> to vector<8x1xf32>
    %101 = vector.shape_cast %100 : vector<8x1xf32> to vector<8xf32>
    %102 = vector.shape_cast %101 : vector<8xf32> to vector<8x1xf32>
    %cst_10 = arith.constant 0.000000e+00 : f32
    %103 = vector.shape_cast %102 : vector<8x1xf32> to vector<8x1xf32>
    %104 = vector.broadcast %103 : vector<8x1xf32> to vector<8x128xf32>
    %105 = vector.broadcast %cst_10 : f32 to vector<8x128xf32>
    %106 = arith.select %99, %104, %105 : vector<8x128xi1>, vector<8x128xf32>
    %107 = arith.addf %94, %106 : vector<8x128xf32>
    %cst_11 = arith.constant dense<0.000000e+00> : vector<8xf32>
    %108 = vector.multi_reduction <add>, %1, %cst_11 [1] : vector<8x8xf32> to vector<8xf32>
    %109 = vector.shape_cast %108 : vector<8xf32> to vector<8x1xf32>
    %110 = tpu.reciprocal %109 {approx = true} : vector<8x1xf32> -> vector<8x1xf32>
    %111 = arith.truncf %107 : vector<8x128xf32> to vector<8x128xbf16>
    %c0_12 = arith.constant 0 : index
    %c0_13 = arith.constant 0 : index
    %112 = vector.load %arg3[%c0_12, %c0_13] : memref<128x256xbf16, #tpu.memory_space<vmem>>, vector<128x256xbf16>
    %cst_14 = arith.constant dense<0.000000e+00> : vector<8x256xf32>
    %113 = tpu.matmul %111, %112, %cst_14 {dimension_numbers = #tpu.dot_dimension_numbers<[1], [0], [0], [1], [0, 0, 1, 1], [], []>} : vector<8x128xbf16>, vector<128x256xbf16>, vector<8x256xf32> -> vector<8x256xf32>
    %114 = vector.broadcast %110 : vector<8x1xf32> to vector<8x256xf32>
    %115 = arith.mulf %114, %113 : vector<8x256xf32>
    %c0_15 = arith.constant 0 : index
    %c0_16 = arith.constant 0 : index
    %116 = vector.load %arg4[%c0_15, %c0_16] : memref<1x256xf32, #tpu.memory_space<vmem>>, vector<1x256xf32>
    %117 = vector.broadcast %116 : vector<1x256xf32> to vector<8x256xf32>
    %118 = arith.addf %115, %117 : vector<8x256xf32>
    %cst_17 = arith.constant 0.000000e+00 : f32
    %119 = vector.broadcast %cst_17 : f32 to vector<8x256xf32>
    %120 = arith.maximumf %118, %119 : vector<8x256xf32>
    %121 = arith.truncf %120 : vector<8x256xf32> to vector<8x256xbf16>
    %c0_18 = arith.constant 0 : index
    %c0_19 = arith.constant 0 : index
    %122 = vector.load %arg5[%c0_18, %c0_19] : memref<256x128xbf16, #tpu.memory_space<vmem>>, vector<256x128xbf16>
    %cst_20 = arith.constant dense<0.000000e+00> : vector<8x128xf32>
    %123 = tpu.matmul %121, %122, %cst_20 {dimension_numbers = #tpu.dot_dimension_numbers<[1], [0], [0], [1], [0, 0, 1, 1], [], []>} : vector<8x256xbf16>, vector<256x128xbf16>, vector<8x128xf32> -> vector<8x128xf32>
    %c0_21 = arith.constant 0 : index
    %c0_22 = arith.constant 0 : index
    %124 = vector.load %arg6[%c0_21, %c0_22] : memref<1x128xf32, #tpu.memory_space<vmem>>, vector<1x128xf32>
    %125 = vector.broadcast %124 : vector<1x128xf32> to vector<8x128xf32>
    %126 = arith.addf %123, %125 : vector<8x128xf32>
    %c0_23 = arith.constant 0 : index
    %c0_24 = arith.constant 0 : index
    %127 = vector.load %arg7[%c0_23, %c0_24] : memref<8x128xf32, #tpu.memory_space<vmem>>, vector<8x128xf32>
    tpu.vector_store %arg7[%c0_23, %c0_24], %126 {strides = array<i32>} : memref<8x128xf32, #tpu.memory_space<vmem>>, vector<8x128xf32>,
    return
  }
  func.func @transform_0(%arg0: i32) -> (i32, i32) {
    %c0_i32 = arith.constant 0 : i32
    %c0_i32_0 = arith.constant 0 : i32
    return %arg0, %c0_i32 : i32, i32
  }
  func.func @transform_1(%arg0: i32) -> (i32, i32) {
    %c0_i32 = arith.constant 0 : i32
    %c0_i32_0 = arith.constant 0 : i32
    return %arg0, %c0_i32 : i32, i32
  }
  func.func @transform_2(%arg0: i32) -> (i32, i32) {
    %c0_i32 = arith.constant 0 : i32
    %c0_i32_0 = arith.constant 0 : i32
    %c0_i32_1 = arith.constant 0 : i32
    return %c0_i32, %c0_i32_0 : i32, i32
  }
  func.func @transform_3(%arg0: i32) -> (i32, i32) {
    %c0_i32 = arith.constant 0 : i32
    %c0_i32_0 = arith.constant 0 : i32
    %c0_i32_1 = arith.constant 0 : i32
    return %c0_i32, %c0_i32_0 : i32, i32
  }
  func.func @transform_4(%arg0: i32) -> (i32, i32) {
    %c0_i32 = arith.constant 0 : i32
    %c0_i32_0 = arith.constant 0 : i32
    %c0_i32_1 = arith.constant 0 : i32
    return %c0_i32, %c0_i32_0 : i32, i32
  }
  func.func @transform_5(%arg0: i32) -> (i32, i32) {
    %c0_i32 = arith.constant 0 : i32
    %c0_i32_0 = arith.constant 0 : i32
    %c0_i32_1 = arith.constant 0 : i32
    return %c0_i32, %c0_i32_0 : i32, i32
  }
  func.func @transform_6(%arg0: i32) -> (i32, i32) {
    %c0_i32 = arith.constant 0 : i32
    %c0_i32_0 = arith.constant 0 : i32
    return %arg0, %c0_i32 : i32, i32
  }
}

</mosaic_0001>

<bundles_post_ra>
// kernel: tpu_custom_call.1
= control target key start
LH: loop header
LB: loop body
LE: loop exit
PB: predicated region body
PF: predicated region fallthrough
CT: control target
= control target key end

     0   :  { %11 = vsyncpa [#allocation3], 0  ;;  %s837_s0 = inlined_call_operand.hbm [shape: s32[8,8], index: 0, kind: input, shape index: {}]   ;;  %s838_s1 = inlined_call_operand.hbm [shape: f32[8,8], index: 1, kind: input, shape index: {}]   ;;  %s839_s2 = inlined_call_operand.hbm [shape: bf16[128,256], index: 2, kind: input, shape index: {}]   ;;  %s840_s3 = inlined_call_operand.vmem [shape: f32[1,256], index: 3, kind: input, shape index: {}]   ;;  %s841_s4 = inlined_call_operand.hbm [shape: bf16[256,128], index: 4, kind: input, shape index: {}]   ;;  %s842_s5 = inlined_call_operand.vmem [shape: f32[1,128], index: 5, kind: input, shape index: {}]   ;;  %s843_s6 = inlined_call_operand.hbm [shape: f32[8,128], index: 6, kind: output, shape index: {}]  }
   0x1   :  { %12 = vsyncpa [#allocation6], 0 }
   0x2   :  { %13 = vsyncpa [#allocation9], 0 }
   0x3   :  { %14 = vsyncpa [#allocation4], 0  ;;  %s753_s21 = smov [#allocation5]   ;;  %s754_s23 = smov [#allocation2]  }
   0x4   :  { %s31_s22 = sshll.u32 %s753_s21, 4  ;;  %s21_s24 = sshll.u32 %s754_s23, 4  ;;  %s32_s22 = int_to_ptr.vmem [resolvable:$true] %s31_s22  ;;  %s22_s24 = int_to_ptr.vmem [resolvable:$true] %s21_s24 }
   0x5   :  { %s653_s25 = scalar_lea.vmem %s32_s22, 128  ;;  %p658_p1 = scmp.lt.s32.totalorder %s32_s22, %s32_s22 }
   0x6   :  { %p654_p0 = scmp.ne.s32.totalorder %s32_s22, %s653_s25  ;;  %p659_p2 = scmp.lt.s32.totalorder %s653_s25, %s653_s25 }
   0x8   :  { %p660_p3 = por %p659_p2, %p658_p1 }
   0xa   :  { %p661_p4 = pnand %p660_p3, %p654_p0 }
   0xc   :  { %664 = shalt.err (!%p661_p4)
}
   0xd   :  { %34 = dma.hbm_to_vmem [thread:$0]  %s838_s1, 128, %s32_s22, [#allocation6]  }
   0xe   :  { %s673_s28 = scalar_lea.vmem %s22_s24, 128  ;;  %p678_p6 = scmp.lt.s32.totalorder %s22_s24, %s22_s24 }
   0xf   :  { %p674_p5 = scmp.ne.s32.totalorder %s22_s24, %s673_s28  ;;  %p679_p7 = scmp.lt.s32.totalorder %s673_s28, %s673_s28 }
  0x11   :  { %p680_p8 = por %p679_p7, %p678_p6 }
  0x13   :  { %p681_p9 = pnand %p680_p8, %p674_p5 }
  0x15   :  { %684 = shalt.err (!%p681_p9)
}
  0x16   :  { %24 = dma.hbm_to_vmem [thread:$0]  %s837_s0, 128, %s22_s24, [#allocation3]  }
  0x17   :  { %s755_s7 = smov [#allocation7]  }
  0x18   :  { %s40_s8 = sshll.u32 %s755_s7, 4  ;;  %s41_s8 = int_to_ptr.vmem [resolvable:$true] %s40_s8 }
  0x19   :  { %s693_s9 = scalar_lea.vmem %s41_s8, 2048  ;;  %p698_p11 = scmp.lt.s32.totalorder %s41_s8, %s41_s8 }
  0x1a   :  { %p694_p10 = scmp.ne.s32.totalorder %s41_s8, %s693_s9  ;;  %p699_p12 = scmp.lt.s32.totalorder %s693_s9, %s693_s9 }
  0x1c   :  { %p700_p13 = por %p699_p12, %p698_p11 }
  0x1e   :  { %p701_p0 = pnand %p700_p13, %p694_p10 }
  0x20   :  { %704 = shalt.err (!%p701_p0)
}
  0x21   :  { %s756_s1 = smov 128   ;;  %s757_s10 = smov 8  }
  0x22   :  { %46 = dma.hbm_to_vmem [thread:$0]  %s839_s2, 2048, %s41_s8, [#allocation6], %s756_s1, %s756_s1, %s757_s10  }
  0x23   :  { %s758_s13 = smov [#allocation8]  }
  0x24   :  { %s54_s14 = sshll.u32 %s758_s13, 4  ;;  %s55_s14 = int_to_ptr.vmem [resolvable:$true] %s54_s14 }
  0x25   :  { %s713_s0 = scalar_lea.vmem %s55_s14, 2048  ;;  %p718_p2 = scmp.lt.s32.totalorder %s55_s14, %s55_s14 }
  0x26   :  { %p714_p1 = scmp.ne.s32.totalorder %s55_s14, %s713_s0  ;;  %p719_p3 = scmp.lt.s32.totalorder %s713_s0, %s713_s0 }
  0x28   :  { %p720_p4 = por %p719_p3, %p718_p2 }
  0x2a   :  { %p721_p5 = pnand %p720_p4, %p714_p1 }
  0x2c   :  { %724 = shalt.err (!%p721_p5)
}
  0x2d   :  { %s759_s15 = smov 64   ;;  %s760_s16 = smov 4  }
  0x2e   :  { %60 = dma.hbm_to_vmem [thread:$0]  %s841_s4, 2048, %s55_s14, [#allocation9], %s759_s15, %s759_s15, %s760_s16  }
  0x2f   :  { %745 = dma.done.wait [#allocation3], 128  }
  0x30   :  { %746 = vsyncadd [#allocation3], 4294967168 }
  0x31   :  { %747 = dma.done.wait [#allocation6], 2176  }
  0x32   :  { %748 = vsyncadd [#allocation6], 4294965120 }
  0x33   :  { %749 = dma.done.wait [#allocation9], 2048  }
  0x34   :  { %750 = vsyncadd [#allocation9], 4294965248  ;;  %v761_v0 = vmov 0   ;;  %v817_v1 = vld [vmem:[#allocation5] sm:$0xff]  ;;  %v76_v2 = vld [vmem:[#allocation2] sm:$0xff]  ;;  %v762_v3 = vmov 1   ;;  %v78_v43 = vlaneseq }
  0x35   :  { %591 = vset.pattern.permute.xlu1 %v761_v0  ;;  %589 = vset.pattern.permute.xlu0 %v761_v0  ;;  %v763_v4 = vmov 2   ;;  %v603_v5 = vld [vmem:[#allocation7 + $0x74] ss:$8 sps:$4 sm:$0xff]   ;;  %v605_v6 = vld [vmem:[#allocation7 + $0x70] ss:$8 sps:$4 sm:$0xff]   ;;  %v764_v7 = vmov 3  }
  0x36   :  { %295 = vmatprep.mubr.bf16.mxu0 %v761_v0  ;;  %86 = vperm.xlu1 %591, %v817_v1   ;;  %v765_v8 = vmov 4   ;;  %v606_v9 = vld [vmem:[#allocation7 + $0x64] ss:$8 sps:$4 sm:$0xff]   ;;  %v608_v10 = vld [vmem:[#allocation7 + $0x60] ss:$8 sps:$4 sm:$0xff]   ;;  %v766_v12 = vmov 5  }
  0x37   :  { %81 = vperm.xlu0 %589, %v76_v2   ;;  %263 = vmatprep.subr.bf16.mxu0 %v603_v5  ;;  %v609_v11 = vld [vmem:[#allocation7 + $0x54] ss:$8 sps:$4 sm:$0xff]   ;;  %v611_v13 = vld [vmem:[#allocation7 + $0x50] ss:$8 sps:$4 sm:$0xff]   ;;  %v612_v14 = vld [vmem:[#allocation7 + $0x44] ss:$8 sps:$4 sm:$0xff]  }
  0x38   :  { %264 = vmatpush1.bf16.msra.mxu0 %v605_v6  ;;  %v614_v15 = vld [vmem:[#allocation7 + $0x40] ss:$8 sps:$4 sm:$0xff]   ;;  %v767_v16 = vmov 7   ;;  %v615_v17 = vld [vmem:[#allocation7 + $0x34] ss:$8 sps:$4 sm:$0xff]   ;;  %v768_v21 = vmov 6  }
  0x39   :  { %265 = vmatprep.subr.bf16.mxu0 %v606_v9  ;;  %v617_v18 = vld [vmem:[#allocation7 + $0x30] ss:$8 sps:$4 sm:$0xff]   ;;  %v618_v19 = vld [vmem:[#allocation7 + $0x24] ss:$8 sps:$4 sm:$0xff]   ;;  %v620_v20 = vld [vmem:[#allocation7 + $0x20] ss:$8 sps:$4 sm:$0xff]  }
  0x3a   :  { %592 = vset.pattern.permute.xlu1 %v762_v3  ;;  %v621_v22 = vld [vmem:[#allocation7 + $0x14] ss:$8 sps:$4 sm:$0xff]   ;;  %v623_v23 = vld [vmem:[#allocation7 + $0x10] ss:$8 sps:$4 sm:$0xff]   ;;  %v624_v24 = vld [vmem:[#allocation7 + $0x4] ss:$8 sps:$4 sm:$0xff]  }
  0x3b   :  { %590 = vset.pattern.permute.xlu0 %v762_v3  ;;  %96 = vperm.xlu1 %592, %v817_v1   ;;  %v626_v25 = vld [vmem:[#allocation7] ss:$8 sps:$4 sm:$0xff]   ;;  %v627_v26 = vld [vmem:[#allocation8 + $0x78] sm:$0xff]   ;;  %v629_v28 = vld [vmem:[#allocation8 + $0x70] sm:$0xff]   ;;  %vm161_vm0 = vcmask 64512   ;;  %v79_v46 = vand.u32 127, %v78_v43 }
  0x3c   :  { %92 = vperm.xlu0 %590, %v76_v2   ;;  %266 = vmatpush1.bf16.msra.mxu0 %v608_v10  ;;  %v628_v27 = vld [vmem:[#allocation8 + $0x38] sm:$0xff]   ;;  %v630_v29 = vld [vmem:[#allocation8 + $0x30] sm:$0xff]   ;;  %v162_v30 = vsel %vm161_vm0, %v817_v1, 0.0  ;;  %v631_v31 = vld [vmem:[#allocation8 + $0x68] sm:$0xff]   ;;  %s769_s20 = smov [#allocation10]  }
  0x3d   :  { %267 = vmatprep.subr.bf16.mxu0 %v609_v11  ;;  %550 = vmatprep.subr.bf16.mxu1 %v627_v26  ;;  %v632_v32 = vld [vmem:[#allocation8 + $0x28] sm:$0xff]   ;;  %v633_v33 = vld [vmem:[#allocation8 + $0x60] sm:$0xff]   ;;  %v635_v35 = vld [vmem:[#allocation8 + $0x58] sm:$0xff]   ;;  %s506_s21 = sshll.u32 %s769_s20, 4  ;;  %s507_s21 = int_to_ptr.vmem [resolvable:$true] %s506_s21 }
  0x3e   :  { %551 = vmatpush3.bf16.msra.mxu1 %v628_v27  ;;  %v634_v34 = vld [vmem:[#allocation8 + $0x20] sm:$0xff]   ;;  %v636_v36 = vld [vmem:[#allocation8 + $0x18] sm:$0xff]   ;;  %v639_v9 = vld [vmem:[#allocation8 + $0x48] sm:$0xff]   ;;  %s725_s22 = scalar_lea.vmem %s507_s21, 128  ;;  %p730_p7 = scmp.lt.s32.totalorder %s507_s21, %s507_s21 }
  0x3f   :  { %593 = vset.pattern.permute.xlu1 %v763_v4  ;;  %552 = vmatprep.subr.bf16.mxu1 %v629_v28  ;;  %v640_v10 = vld [vmem:[#allocation8 + $0x8] sm:$0xff]   ;;  %v641_v11 = vld [vmem:[#allocation8 + $0x40] sm:$0xff]   ;;  %p726_p6 = scmp.ne.s32.totalorder %s507_s21, %s725_s22  ;;  %p731_p8 = scmp.lt.s32.totalorder %s725_s22, %s725_s22 }
  0x40   :  { %594 = vset.pattern.permute.xlu0 %v763_v4  ;;  %102 = vperm.xlu1 %593, %v76_v2  }
  0x41   :  { %106 = vperm.xlu0 %594, %v817_v1   ;;  %268 = vmatpush1.bf16.msra.mxu0 %v611_v13  ;;  %p732_p9 = por %p731_p8, %p730_p7 }
  0x42   :  { %269 = vmatprep.subr.bf16.mxu0 %v612_v14  ;;  %553 = vmatpush3.bf16.msra.mxu1 %v630_v29  ;;  %v309_v14 = vshrl.u32 %v78_v43, 7 }
  0x43   :  { %554 = vmatprep.subr.bf16.mxu1 %v631_v31  ;;  %p733_p10 = pnand %p732_p9, %p726_p6 }
  0x44   :  { %595 = vset.pattern.permute.xlu1 %v764_v7  ;;  %v637_v7 = vld [vmem:[#allocation8 + $0x50] sm:$0xff]  }
  0x45   :  { %596 = vset.pattern.permute.xlu0 %v765_v8  ;;  %112 = vperm.xlu1 %595, %v76_v2  }
  0x46   :  { %122 = vperm.xlu0 %596, %v76_v2   ;;  %270 = vmatpush1.bf16.msra.mxu0 %v614_v15  ;;  %v310_v15 = vsub.s32 0, %v309_v14 }
  0x47   :  { %271 = vmatprep.subr.bf16.mxu0 %v615_v17  ;;  %555 = vmatpush3.bf16.msra.mxu1 %v632_v32  ;;  %v314_v17 = vsub.s32 1, %v309_v14 }
  0x48   :  { %556 = vmatprep.subr.bf16.mxu1 %v633_v33 }
  0x49   :  { %116 = vperm.xlu1 %595, %v817_v1  }
  0x4a   :  { %599 = vset.pattern.permute.xlu0 %v766_v12  ;;  %272 = vmatpush1.bf16.msra.mxu0 %v617_v18 }
  0x4b   :  { %136 = vperm.xlu0 %599, %v817_v1   ;;  %273 = vmatprep.subr.bf16.mxu0 %v618_v19 }
  0x4c   :  { %557 = vmatpush3.bf16.msra.mxu1 %v634_v34  ;;  %v533_v34 = vld [vmem:[%s842_s5] ss:$0 sm:$0xff] }
  0x4d   :  { %597 = vset.pattern.permute.xlu1 %v765_v8  ;;  %558 = vmatprep.subr.bf16.mxu1 %v635_v35  ;;  %v638_v8 = vld [vmem:[#allocation8 + $0x10] sm:$0xff]  }
  0x4e   :  { %126 = vperm.xlu1 %597, %v817_v1   ;;  %274 = vmatpush1.bf16.msra.mxu0 %v620_v20 }
  0x4f   :  { %601 = vset.pattern.permute.xlu0 %v767_v16  ;;  %275 = vmatprep.subr.bf16.mxu0 %v621_v22 }
  0x50   :  { %152 = vperm.xlu0 %601, %v76_v2   ;;  %559 = vmatpush3.bf16.msra.mxu1 %v636_v36 }
  0x51   :  { %560 = vmatprep.subr.bf16.mxu1 %v637_v7 }
  0x52   :  { %598 = vset.pattern.permute.xlu1 %v766_v12  ;;  %276 = vmatpush1.bf16.msra.mxu0 %v623_v23  ;;  %v642_v12 = vld [vmem:[#allocation8] sm:$0xff]  }
  0x53   :  { %132 = vperm.xlu1 %598, %v76_v2   ;;  %277 = vmatprep.subr.bf16.mxu0 %v624_v24 }
  0x54   :  { %561 = vmatpush3.bf16.msra.mxu1 %v638_v8 }
  0x55   :  { %562 = vmatprep.subr.bf16.mxu1 %v639_v9 }
  0x56   :  { %278 = vmatpush1.bf16.msra.mxu0 %v626_v25 }
  0x57   :  { %600 = vset.pattern.permute.xlu1 %v768_v21 }
  0x58   :  { %142 = vperm.xlu1 %600, %v76_v2   ;;  %563 = vmatpush3.bf16.msra.mxu1 %v640_v10 }
  0x59   :  { %564 = vmatprep.subr.bf16.mxu1 %v641_v11 }
  0x5c   :  { %146 = vperm.xlu1 %600, %v817_v1   ;;  %565 = vmatpush3.bf16.msra.mxu1 %v642_v12 }
  0x60   :  { %602 = vset.pattern.permute.xlu1 %v767_v16  ;;  %v306_v16 = vld [vmem:[%s840_s3] sm:$0x3] }
  0x61   :  { %156 = vperm.xlu1 %602, %v817_v1   ;;  %v311_v19 = vrot.slane %v306_v16, %v310_v15  ;;  %v315_v22 = vrot.slane %v306_v16, %v314_v17 }
  0x85   :  { %163 = vadd.xlane.f32.xlu1 %v162_v30 }
  0xb1   :  { %v87_v37 = vpop.permute.xlu1 %86 }
  0xb2   :  { %v82_v41 = vpop.permute.xlu0 %81 }
  0xb3   :  { %vm83_vm2 = vcmp.eq.s32.totalorder %v82_v41, %v79_v46 }
  0xb4   :  { %v89_v51 = vsel %vm83_vm2, %v87_v37, 0.0 }
  0xb6   :  { %v97_v38 = vpop.permute.xlu1 %96 }
  0xb7   :  { %v93_v44 = vpop.permute.xlu0 %92 }
  0xb8   :  { %vm94_vm1 = vcmp.eq.s32.totalorder %v93_v44, %v79_v46 }
  0xb9   :  { %v99_v49 = vsel %vm94_vm1, %v97_v38, 0.0 }
  0xba   :  { %v100_v53 = vadd.f32 %v99_v49, %v89_v51 }
  0xbb   :  { %v103_v39 = vpop.permute.xlu1 %102 }
  0xbc   :  { %v107_v47 = vpop.permute.xlu0 %106  ;;  %vm104_vm3 = vcmp.eq.s32.totalorder %v103_v39, %v79_v46 }
  0xbd   :  { %v109_v52 = vsel %vm104_vm3, %v107_v47, 0.0 }
  0xbe   :  { %v110_v57 = vadd.f32 %v109_v52, %v100_v53 }
  0xc0   :  { %v113_v40 = vpop.permute.xlu1 %112 }
  0xc1   :  { %v123_v50 = vpop.permute.xlu0 %122  ;;  %vm114_vm4 = vcmp.eq.s32.totalorder %v113_v40, %v79_v46 }
  0xc2   :  { %vm124_vm5 = vcmp.eq.s32.totalorder %v123_v50, %v79_v46 }
  0xc4   :  { %v117_v42 = vpop.permute.xlu1 %116 }
  0xc5   :  { %v119_v54 = vsel %vm114_vm4, %v117_v42, 0.0 }
  0xc6   :  { %v137_v55 = vpop.permute.xlu0 %136  ;;  %v120_v59 = vadd.f32 %v119_v54, %v110_v57 }
  0xc9   :  { %v127_v45 = vpop.permute.xlu1 %126 }
  0xca   :  { %v129_v58 = vsel %vm124_vm5, %v127_v45, 0.0 }
  0xcb   :  { %v153_v62 = vpop.permute.xlu0 %152  ;;  %v130_v63 = vadd.f32 %v129_v58, %v120_v59 }
  0xcc   :  { %vm154_vm8 = vcmp.eq.s32.totalorder %v153_v62, %v79_v46 }
  0xce   :  { %v133_v48 = vpop.permute.xlu1 %132 }
  0xcf   :  { %vm134_vm6 = vcmp.eq.s32.totalorder %v133_v48, %v79_v46 }
  0xd0   :  { %v139_v60 = vsel %vm134_vm6, %v137_v55, 0.0 }
  0xd1   :  { %v140_v1 = vadd.f32 %v139_v60, %v130_v63 }
  0xd3   :  { %v143_v56 = vpop.permute.xlu1 %142 }
  0xd4   :  { %vm144_vm7 = vcmp.eq.s32.totalorder %v143_v56, %v79_v46 }
  0xd7   :  { %v147_v61 = vpop.permute.xlu1 %146 }
  0xd8   :  { %v149_v0 = vsel %vm144_vm7, %v147_v61, 0.0 }
  0xd9   :  { %v150_v2 = vadd.f32 %v149_v0, %v140_v1 }
  0xdc   :  { %v157_v3 = vpop.permute.xlu1 %156 }
  0xdd   :  { %v159_v4 = vsel %vm154_vm8, %v157_v3, 0.0 }
  0xde   :  { %v160_v5 = vadd.f32 %v159_v4, %v150_v2 }
  0xe0   :  { %v166_v6 = vpack.c.bf16 %v160_v5, %v160_v5 }
  0xe2   :  { %296 = vmatmul.mubr.bf16.vlgmr.msra.gmra.mxu0 %v166_v6 }
 0x10e   :  { %v164_v13 = vpop.xlane.xlu1 %163 }
 0x10f   :  { %643 = vrcp.f32 %v164_v13 }
 0x11c   :  { %v644_v18 = vpop.eup %643 }
 0x1a2   :  { %v297_v20 = vpop.f32.mrf.mxu0 }
 0x1a3   :  { %v304_v21 = vmul.f32 %v644_v18, %v297_v20 }
 0x1a4   :  { %v299_v23 = vpop.f32.mrf.mxu0 }
 0x1a5   :  { %v318_v24 = vadd.f32 %v311_v19, %v304_v21  ;;  %v305_v25 = vmul.f32 %v644_v18, %v299_v23 }
 0x1a6   :  { %v301_v26 = vpop.f32.mrf.mxu0 }
 0x1a7   :  { %v319_v27 = vadd.f32 %v315_v22, %v305_v25  ;;  %v320_v28 = vmax.f32 %v318_v24, 0.0 }
 0x1a8   :  { %v302_v29 = vpop.f32.mrf.mxu0 }
 0x1a9   :  { %v321_v30 = vmax.f32 %v319_v27, 0.0  ;;  %v322_v32 = vpack.c.bf16 %v320_v28, %v320_v28 }
 0x1ab   :  { %v323_v31 = vpack.c.bf16 %v321_v30, %v321_v30 }
 0x1ad   :  { %491 = vmatprep.mubr.bf16.mxu1 %v323_v31 }
 0x1ae   :  { %492 = vmatmul.mubr.bf16.vlgmr.msra.gmra.mxu1 %v322_v32 }
 0x26e   :  { %v566_v33 = vpop.f32.mrf.mxu1 }
 0x270   :  { %v567_v35 = vpop.f32.mrf.mxu1 }
 0x271   :  { %v568_v36 = vadd.f32 %v567_v35, %v566_v33 }
 0x272   :  { %v569_v37 = vpop.f32.mrf.mxu1 }
 0x273   :  { %v494_v38 = vadd.f32 %v568_v36, %v533_v34 }
 0x274   :  { %v570_v39 = vpop.f32.mrf.mxu1 }
 0x275   :  { %499 = vst [vmem:[#allocation10] sm:$0xff] %v494_v38 }
 0x276   :  { %736 = shalt.err (!%p733_p10)
}
 0x277   :  { %509 = dma.vmem_to_hbm [thread:$0]  %s507_s21, 128, %s843_s6, [#allocation4]  }
 0x278   :  { %751 = dma.done.wait [#allocation4], 128  }
 0x279   :  { %752 = vsyncadd [#allocation4], 4294967168 }
 0x27a   :  { %513 = vsyncpa [#allocation3], 1 }
 0x27b   :  { %514 = vsyncpa [#allocation6], 1 }
 0x27c   :  { %515 = vsyncpa [#allocation9], 1 }
 0x27d   :  { %516 = vsyncpa [#allocation4], 1 }

</bundles_post_ra>
